<compile_context>
chip_gen: v7x
topology: tpu7x:2x2x1
jax: 0.10.0
libtpu: 0.0.40
codegen_flags: <defaults>
</compile_context>

<pallas_src>
import jax
import jax.numpy as jnp
from jax import lax
from jax.experimental import pallas as pl
from jax.experimental.pallas import tpu as pltpu

# dot_general dims: contract lhs dim 1 with rhs dim 1 (A @ B^T, "NT" form).
_NT_DIMS = (((1,), (1,)), ((), ()))


def mlp_controller_kernel(x_ref, w1t_ref, b1t_ref, w2t_ref, b2t_ref, o_ref):
    # x tile: (TILE_B, D_in); batch lives on sublanes here, on lanes afterwards.
    x = x_ref[...]

    # ---- fc + sigmoid, transposed: hT = sigmoid(W1^T x^T + b1) -> (hidden, TILE_B)
    h_t = lax.dot_general(w1t_ref[...], x, _NT_DIMS,
                          preferred_element_type=jnp.float32)
    h_t = h_t + b1t_ref[...]                       # (hidden, 1) bcast over lanes
    h_t = 1.0 / (1.0 + jnp.exp(-h_t))

    # ---- fc1, transposed: logitsT = W2^T hT + b2 -> (out, TILE_B)
    logits_t = jnp.dot(w2t_ref[...], h_t, preferred_element_type=jnp.float32)
    logits_t = logits_t + b2t_ref[...]             # (out, 1) bcast over lanes

    # ---- softmax over the feature axis (= sublane axis 0)
    m = jnp.max(logits_t, axis=0, keepdims=True)   # (1, TILE_B)
    e = jnp.exp(logits_t - m)
    s = jnp.sum(e, axis=0, keepdims=True)
    o_ref[...] = e / s                             # lane-dense (out, TILE_B) store


def mlp_controller(x, w1, b1, w2, b2, *, tile_b=2048):
    """x: (batch, in); w1: (in, hidden); b1: (1, hidden); w2: (hidden, out);
    b2: (1, out).  Returns softmax(sigmoid(x@w1+b1)@w2+b2) with shape
    (batch, out)."""
    batch, in_features = x.shape
    hidden = w1.shape[1]
    out_dim = w2.shape[1]

    # Re-lay-out the tiny constants once (a few KiB; trace-time only).
    w1t = w1.T                        # (hidden, in)
    b1t = b1.reshape(hidden, 1)       # (hidden, 1)
    w2t = w2.T                        # (out, hidden)
    b2t = b2.reshape(out_dim, 1)      # (out, 1)

    # Batch tile = lane dim of the output block: either the whole batch
    # (single block; block dims equal the full array dims) or a multiple of
    # 128 (lane-dense, unmasked stores).  tile_b=4096..8192 is fine on v7x.
    if batch <= tile_b:
        tb = batch
    else:
        tb = max(128, (tile_b // 128) * 128)
    grid = (pl.cdiv(batch, tb),)      # boundary block (if any) is clipped

    out_t = pl.pallas_call(
        mlp_controller_kernel,
        out_shape=jax.ShapeDtypeStruct((out_dim, batch), jnp.float32),
        grid=grid,
        in_specs=[
            pl.BlockSpec((tb, in_features), lambda i: (i, 0)),      # x: tiled over batch
            pl.BlockSpec((hidden, in_features), lambda i: (0, 0)),  # weights resident
            pl.BlockSpec((hidden, 1), lambda i: (0, 0)),
            pl.BlockSpec((out_dim, hidden), lambda i: (0, 0)),
            pl.BlockSpec((out_dim, 1), lambda i: (0, 0)),
        ],
        out_specs=pl.BlockSpec((out_dim, tb), lambda i: (0, i)),    # batch on lanes
        compiler_params=pltpu.CompilerParams(
            dimension_semantics=("parallel",)),  # shard batch loop across TCs (v7x)
    )(x, w1t, b1t, w2t, b2t)

    # (out, batch) -> (batch, out).  Layout plumbing only (~80 B/row), replacing
    # the old padded write + full padded-buffer slice (~1 KiB/row).
    return out_t.T


def init_params(key, in_features, out_features, hidden=20):
    # Deterministic PyTorch-style init: U(-1/sqrt(fan_in), 1/sqrt(fan_in)).
    k1, k2, k3, k4 = jax.random.split(key, 4)
    lim1 = 1.0 / jnp.sqrt(jnp.float32(in_features))
    lim2 = 1.0 / jnp.sqrt(jnp.float32(hidden))
    # Stored in the "math" orientation: (in, out), so reference is x @ W.
    w1 = jax.random.uniform(k1, (in_features, hidden), jnp.float32, -lim1, lim1)
    b1 = jax.random.uniform(k2, (1, hidden), jnp.float32, -lim1, lim1)
    w2 = jax.random.uniform(k3, (hidden, out_features), jnp.float32, -lim2, lim2)
    b2 = jax.random.uniform(k4, (1, out_features), jnp.float32, -lim2, lim2)
    return w1, b1, w2, b2


def _reference(x, w1, b1, w2, b2):
    h = jax.nn.sigmoid(x @ w1 + b1)
    return jax.nn.softmax(h @ w2 + b2, axis=1)


if __name__ == "__main__":
    key = jax.random.PRNGKey(0)
    kx, kp, kx2, kx3 = jax.random.split(key, 4)

    batch, in_features, out_features = 8, 32, 10
    x = jax.random.normal(kx, (batch, in_features), jnp.float32)
    w1, b1, w2, b2 = init_params(kp, in_features, out_features)

    out = jax.block_until_ready(mlp_controller(x, w1, b1, w2, b2))
    ref = _reference(x, w1, b1, w2, b2)
    assert out.shape == (batch, out_features)
    assert jnp.allclose(out, ref, atol=1e-5, rtol=1e-5)
    assert jnp.allclose(jnp.sum(out, axis=1), 1.0, atol=1e-5)

    # Batch that is not a multiple of 8: single block whose dims equal the
    # full array dims (no padding, no copies).
    batch2 = 20
    x2 = jax.random.normal(kx2, (batch2, in_features), jnp.float32)
    out2 = jax.block_until_ready(mlp_controller(x2, w1, b1, w2, b2))
    ref2 = _reference(x2, w1, b1, w2, b2)
    assert out2.shape == (batch2, out_features)
    assert jnp.allclose(out2, ref2, atol=1e-5, rtol=1e-5)
    assert jnp.allclose(jnp.sum(out2, axis=1), 1.0, atol=1e-5)

    # Multi-step grid (grid=(3,)) with lane-dense 128-wide output blocks.
    batch3 = 384
    x3 = jax.random.normal(kx3, (batch3, in_features), jnp.float32)
    out3 = jax.block_until_ready(mlp_controller(x3, w1, b1, w2, b2, tile_b=128))
    ref3 = _reference(x3, w1, b1, w2, b2)
    assert out3.shape == (batch3, out_features)
    assert jnp.allclose(out3, ref3, atol=1e-5, rtol=1e-5)
    assert jnp.allclose(jnp.sum(out3, axis=1), 1.0, atol=1e-5)

    print("KERNEL_OK")
</pallas_src>

<mosaic_0001>
module attributes {stable_mosaic.version = 11 : i64} {
  func.func @mlp_controller_kernel(%arg0: i32, %arg1: memref<8x32xf32, #tpu.memory_space<vmem>>, %arg2: memref<20x32xf32, #tpu.memory_space<vmem>>, %arg3: memref<20x1xf32, #tpu.memory_space<vmem>>, %arg4: memref<10x20xf32, #tpu.memory_space<vmem>>, %arg5: memref<10x1xf32, #tpu.memory_space<vmem>>, %arg6: memref<10x8xf32, #tpu.memory_space<vmem>>) attributes {dimension_semantics = [#tpu.dimension_semantics<parallel>], iteration_bounds = array<i64: 1>, scalar_prefetch = 0 : i64, scratch_operands = 0 : i64, tpu.core_type = #tpu.core_type<tc>, window_params = [{transform_indices = @transform_0, window_bounds = array<i64: 8, 32>}, {pipeline_mode = #tpu.pipeline_mode<synchronous>, transform_indices = @transform_1, window_bounds = array<i64: 20, 32>}, {pipeline_mode = #tpu.pipeline_mode<synchronous>, transform_indices = @transform_2, window_bounds = array<i64: 20, 1>}, {pipeline_mode = #tpu.pipeline_mode<synchronous>, transform_indices = @transform_3, window_bounds = array<i64: 10, 20>}, {pipeline_mode = #tpu.pipeline_mode<synchronous>, transform_indices = @transform_4, window_bounds = array<i64: 10, 1>}, {transform_indices = @transform_5, window_bounds = array<i64: 10, 8>}]} {
    %c0 = arith.constant 0 : index
    %c0_0 = arith.constant 0 : index
    %0 = vector.load %arg1[%c0, %c0_0] : memref<8x32xf32, #tpu.memory_space<vmem>>, vector<8x32xf32>
    %c0_1 = arith.constant 0 : index
    %c0_2 = arith.constant 0 : index
    %1 = vector.load %arg2[%c0_1, %c0_2] : memref<20x32xf32, #tpu.memory_space<vmem>>, vector<20x32xf32>
    %cst = arith.constant dense<0.000000e+00> : vector<20x8xf32>
    %2 = tpu.matmul %1, %0, %cst {dimension_numbers = #tpu.dot_dimension_numbers<[1], [1], [0], [0], [0, 0, 1, 0], [], []>} : vector<20x32xf32>, vector<8x32xf32>, vector<20x8xf32> -> vector<20x8xf32>
    %c0_3 = arith.constant 0 : index
    %c0_4 = arith.constant 0 : index
    %3 = vector.load %arg3[%c0_3, %c0_4] : memref<20x1xf32, #tpu.memory_space<vmem>>, vector<20x1xf32>
    %4 = vector.broadcast %3 : vector<20x1xf32> to vector<20x8xf32>
    %5 = arith.addf %2, %4 : vector<20x8xf32>
    %cst_5 = arith.constant 0.000000e+00 : f32
    %6 = vector.broadcast %cst_5 : f32 to vector<20x8xf32>
    %7 = arith.subf %6, %5 : vector<20x8xf32>
    %8 = math.exp %7 : vector<20x8xf32>
    %cst_6 = arith.constant 1.000000e+00 : f32
    %9 = vector.broadcast %cst_6 : f32 to vector<20x8xf32>
    %10 = arith.addf %9, %8 : vector<20x8xf32>
    %cst_7 = arith.constant 1.000000e+00 : f32
    %11 = vector.broadcast %cst_7 : f32 to vector<20x8xf32>
    %12 = arith.divf %11, %10 : vector<20x8xf32>
    %c0_8 = arith.constant 0 : index
    %c0_9 = arith.constant 0 : index
    %13 = vector.load %arg4[%c0_8, %c0_9] : memref<10x20xf32, #tpu.memory_space<vmem>>, vector<10x20xf32>
    %cst_10 = arith.constant dense<0.000000e+00> : vector<10x8xf32>
    %14 = tpu.matmul %13, %12, %cst_10 {dimension_numbers = #tpu.dot_dimension_numbers<[1], [0], [0], [1], [0, 0, 1, 1], [], []>} : vector<10x20xf32>, vector<20x8xf32>, vector<10x8xf32> -> vector<10x8xf32>
    %c0_11 = arith.constant 0 : index
    %c0_12 = arith.constant 0 : index
    %15 = vector.load %arg5[%c0_11, %c0_12] : memref<10x1xf32, #tpu.memory_space<vmem>>, vector<10x1xf32>
    %16 = vector.broadcast %15 : vector<10x1xf32> to vector<10x8xf32>
    %17 = arith.addf %14, %16 : vector<10x8xf32>
    %cst_13 = arith.constant dense<0xFF800000> : vector<8xf32>
    %18 = vector.multi_reduction <maximumf>, %17, %cst_13 [0] : vector<10x8xf32> to vector<8xf32>
    %19 = vector.shape_cast %18 : vector<8xf32> to vector<1x8xf32>
    %20 = vector.broadcast %19 : vector<1x8xf32> to vector<10x8xf32>
    %21 = arith.subf %17, %20 : vector<10x8xf32>
    %22 = math.exp %21 : vector<10x8xf32>
    %cst_14 = arith.constant dense<0.000000e+00> : vector<8xf32>
    %23 = vector.multi_reduction <add>, %22, %cst_14 [0] : vector<10x8xf32> to vector<8xf32>
    %24 = vector.shape_cast %23 : vector<8xf32> to vector<1x8xf32>
    %25 = vector.broadcast %24 : vector<1x8xf32> to vector<10x8xf32>
    %26 = arith.divf %22, %25 : vector<10x8xf32>
    %c0_15 = arith.constant 0 : index
    %c0_16 = arith.constant 0 : index
    %27 = vector.load %arg6[%c0_15, %c0_16] : memref<10x8xf32, #tpu.memory_space<vmem>>, vector<10x8xf32>
    tpu.vector_store %arg6[%c0_15, %c0_16], %26 {strides = array<i32>} : memref<10x8xf32, #tpu.memory_space<vmem>>, vector<10x8xf32>,
    return
  }
  func.func @transform_0(%arg0: i32) -> (i32, i32) {
    %c0_i32 = arith.constant 0 : i32
    %c0_i32_0 = arith.constant 0 : i32
    return %arg0, %c0_i32 : i32, i32
  }
  func.func @transform_1(%arg0: i32) -> (i32, i32) {
    %c0_i32 = arith.constant 0 : i32
    %c0_i32_0 = arith.constant 0 : i32
    %c0_i32_1 = arith.constant 0 : i32
    return %c0_i32, %c0_i32_0 : i32, i32
  }
  func.func @transform_2(%arg0: i32) -> (i32, i32) {
    %c0_i32 = arith.constant 0 : i32
    %c0_i32_0 = arith.constant 0 : i32
    %c0_i32_1 = arith.constant 0 : i32
    return %c0_i32, %c0_i32_0 : i32, i32
  }
  func.func @transform_3(%arg0: i32) -> (i32, i32) {
    %c0_i32 = arith.constant 0 : i32
    %c0_i32_0 = arith.constant 0 : i32
    %c0_i32_1 = arith.constant 0 : i32
    return %c0_i32, %c0_i32_0 : i32, i32
  }
  func.func @transform_4(%arg0: i32) -> (i32, i32) {
    %c0_i32 = arith.constant 0 : i32
    %c0_i32_0 = arith.constant 0 : i32
    %c0_i32_1 = arith.constant 0 : i32
    return %c0_i32, %c0_i32_0 : i32, i32
  }
  func.func @transform_5(%arg0: i32) -> (i32, i32) {
    %c0_i32 = arith.constant 0 : i32
    %c0_i32_0 = arith.constant 0 : i32
    return %c0_i32, %arg0 : i32, i32
  }
}

</mosaic_0001>

<bundles_post_ra>
// kernel: tpu_custom_call.1
= control target key start
LH: loop header
LB: loop body
LE: loop exit
PB: predicated region body
PF: predicated region fallthrough
CT: control target
= control target key end

     0   :  { %10 = vsyncpa [#allocation3], 0  ;;  %s389_s18 = smov [#allocation2]   ;;  %s486_s0 = inlined_call_operand.hbm [shape: f32[8,32], index: 0, kind: input, shape index: {}]   ;;  %s487_s1 = inlined_call_operand.vmem [shape: f32[20,32], index: 1, kind: input, shape index: {}]   ;;  %s488_s2 = inlined_call_operand.vmem [shape: f32[20,1], index: 2, kind: input, shape index: {}]   ;;  %s489_s3 = inlined_call_operand.vmem [shape: f32[10,20], index: 3, kind: input, shape index: {}]   ;;  %s490_s4 = inlined_call_operand.vmem [shape: f32[10,1], index: 4, kind: input, shape index: {}]   ;;  %s491_s5 = inlined_call_operand.vmem [shape: f32[10,8], index: 5, kind: output, shape index: {}]  }
   0x1   :  { %s17_s19 = sshll.u32 %s389_s18, 4  ;;  %s365_s22 = scalar_lea.hbm %s486_s0, 128  ;;  %s18_s19 = int_to_ptr.vmem [resolvable:$true] %s17_s19 }
   0x2   :  { %p366_p0 = scmp.ne.s32.totalorder %s486_s0, %s365_s22  ;;  %p369_p1 = scmp.lt.u32.totalorder %s365_s22, %s486_s0 }
   0x4   :  { %p371_p2 = pnand %p369_p1, %p366_p0 }
   0x6   :  { %374 = shalt.err (!%p371_p2)
}
   0x7   :  { %s375_s27 = scalar_lea.vmem %s18_s19, 128  ;;  %p380_p4 = scmp.lt.s32.totalorder %s18_s19, %s18_s19 }
   0x8   :  { %p376_p3 = scmp.ne.s32.totalorder %s18_s19, %s375_s27  ;;  %p381_p5 = scmp.lt.s32.totalorder %s375_s27, %s375_s27 }
   0xa   :  { %p382_p6 = por %p381_p5, %p380_p4 }
   0xc   :  { %p383_p7 = pnand %p382_p6, %p376_p3 }
   0xe   :  { %386 = shalt.err (!%p383_p7)
}
   0xf   :  { %20 = dma.hbm_to_vmem [thread:$0]  %s486_s0, 128, %s18_s19, [#allocation3]  }
  0x10   :  { %387 = dma.done.wait [#allocation3], 128  }
  0x11   :  { %388 = vsyncadd [#allocation3], 4294967168  ;;  %v390_v0 = vmov 0.0   ;;  %vm391_vm0 = vmmov 0   ;;  %v392_v1 = vmov 0   ;;  %vm54_vm1 = vcmask 261120  }
  0x12   :  { %317 = vmatprep.subr.mxu0 %v390_v0  ;;  %319 = vmatprep.mubr.msk.f32.mxu0 %vm391_vm0, %v390_v0  ;;  %v32_v2 = vld [vmem:[#allocation2] sm:$0xff]  ;;  %v38_v5 = vld [vmem:[%s488_s2 + $0x10] sm:$0xf]  ;;  %v37_v6 = vld [vmem:[%s488_s2 + $0x8] sm:$0xff]  ;;  %vm179_vm2 = vcmask 162816   ;;  %vm186_vm3 = vcmask 1043456  }
  0x13   :  { %345 = vset.pattern.permute.xlu0 %v392_v1  ;;  %346 = vset.pattern.permute.xlu1 %v392_v1  ;;  %v33_v3 = vld [vmem:[%s487_s1] sm:$0xff]  ;;  %v34_v8 = vld [vmem:[%s487_s1 + $0x8] sm:$0xff]  ;;  %v35_v10 = vld [vmem:[%s487_s1 + $0x10] sm:$0xf]  ;;  %vm267_vm4 = vcmask 58368   ;;  %vm265_vm5 = vcmask 64512  }
  0x14   :  { %318 = vmatpush3.xpose.msk.msra.mxu0 %vm54_vm1, %v32_v2  ;;  %v36_v4 = vld [vmem:[%s488_s2] sm:$0xff]  ;;  %51 = vperm.xlu1 %346, %v38_v5   ;;  %v168_v9 = vld [vmem:[%s490_s4 + $0x8] sm:$0x3] }
  0x15   :  { %41 = vperm.xlu0 %345, %v36_v4   ;;  %v167_v7 = vld [vmem:[%s490_s4] sm:$0xff]  ;;  %v166_v40 = vld [vmem:[%s489_s3 + $0x8] sm:$0x3] }
  0x16   :  { %v165_v11 = vld [vmem:[%s489_s3] sm:$0xff] }
  0x17   :  { %320 = vmatmul.mubr.msk.f32.vlgmr.msra.gmra.mrb[0].mxu0 %vm54_vm1, %v33_v3  ;;  %334 = vmatprep.mubr.msk.f32.mxu1 %vm179_vm2, %v165_v11 }
  0x18   :  { %322 = vmatprep.mubr.msk.f32.mxu0 %vm391_vm0, %v390_v0  ;;  %171 = vperm.xlu1 %346, %v167_v7  }
  0x19   :  { %46 = vperm.xlu0 %345, %v37_v6  }
  0x1b   :  { %323 = vmatmul.mubr.msk.f32.gmra.mrb[2].mxu0 %vm54_vm1, %v34_v8 }
  0x1c   :  { %325 = vmatprep.mubr.msk.f32.mxu0 %vm391_vm0, %v390_v0 }
  0x1d   :  { %176 = vperm.xlu0 %345, %v168_v9  }
  0x1f   :  { %326 = vmatmul.mubr.msk.f32.gmra.mrb[4].mxu0 %vm54_vm1, %v35_v10 }
  0x93   :  { %v52_v23 = vpop.permute.xlu1 %51 }
  0x94   :  { %v42_v12 = vpop.permute.xlu0 %41 }
  0x97   :  { %v172_v43 = vpop.permute.xlu1 %171 }
  0x98   :  { %v47_v17 = vpop.permute.xlu0 %46 }
  0x9c   :  { %v177_v41 = vpop.permute.xlu0 %176 }
  0xea   :  { %v133_v13 = vpop.f32.mrb[0].mxu0 }
  0xeb   :  { %v134_v14 = vadd.f32 %v133_v13, %v42_v12  ;;  %v321_v15 = vpop.f32.mrb[1].mxu0 }
  0xed   :  { %v147_v16 = vsub.f32 0.0, %v134_v14 }
  0xee   :  { %v138_v18 = vpop.f32.mrb[2].mxu0 }
  0xef   :  { %v150_v19 = vmul.f32 1.442695, %v147_v16  ;;  %v139_v20 = vadd.f32 %v138_v18, %v47_v17  ;;  %v324_v21 = vpop.f32.mrb[3].mxu0 }
  0xf1   :  { %347 = vpow2.f32 %v150_v19  ;;  %v148_v22 = vsub.f32 0.0, %v139_v20 }
  0xf2   :  { %v143_v24 = vpop.f32.mrb[4].mxu0 }
  0xf3   :  { %v152_v25 = vmul.f32 1.442695, %v148_v22  ;;  %v144_v26 = vadd.f32 %v143_v24, %v52_v23  ;;  %v327_v27 = vpop.f32.mrb[5].mxu0 }
  0xf5   :  { %349 = vpow2.f32 %v152_v25  ;;  %v149_v28 = vsub.f32 0.0, %v144_v26 }
  0xf7   :  { %v154_v29 = vmul.f32 1.442695, %v149_v28 }
  0xf9   :  { %351 = vpow2.f32 %v154_v29 }
  0xfb   :  { %v348_v30 = vpop.eup %347 }
  0xfc   :  { %v156_v31 = vadd.f32 1.0, %v348_v30 }
  0xfe   :  { %353 = vrcp.f32 %v156_v31 }
  0xff   :  { %v350_v32 = vpop.eup %349 }
 0x100   :  { %v157_v33 = vadd.f32 1.0, %v350_v32 }
 0x102   :  { %355 = vrcp.f32 %v157_v33 }
 0x103   :  { %v352_v34 = vpop.eup %351 }
 0x104   :  { %v158_v35 = vadd.f32 1.0, %v352_v34 }
 0x106   :  { %357 = vrcp.f32 %v158_v35 }
 0x108   :  { %v354_v36 = vpop.eup %353 }
 0x10c   :  { %v356_v37 = vpop.eup %355 }
 0x10d   :  { %v337_v38 = vpack.c.bf16 %v356_v37, %v354_v36 }
 0x10f   :  { %338 = vmatprep.subr.bf16.mxu1 %v337_v38 }
 0x110   :  { %v358_v39 = vpop.eup %357  ;;  %340 = vmatpush3.bf16.msra.mxu1 %v337_v38 }
 0x111   :  { %332 = vmatprep.subr.msk.mxu1 %vm186_vm3, %v358_v39 }
 0x114   :  { %333 = vmatpush3.msk.msra.mxu1 %vm186_vm3, %v358_v39 }
 0x115   :  { %335 = vmatmul.mubr.msk.f32.vlgmr.msra.gmra.mrb[0].mxu1 %vm179_vm2, %v166_v40 }
 0x1e8   :  { %v336_v42 = vpop.f32.mrb[0].mxu1 }
 0x1e9   :  { %v262_v44 = vadd.f32 %v336_v42, %v177_v41  ;;  %v256_v45 = vpop.f32.mrb[1].mxu1 }
 0x1ea   :  { %v257_v46 = vadd.f32 %v256_v45, %v172_v43 }
 0x1eb   :  { %v268_v47 = vsel %vm267_vm4, %v262_v44, -inf }
 0x1ec   :  { %v266_v48 = vsel %vm265_vm5, %v257_v46, -inf }
 0x1ed   :  { %v269_v49 = vmax.f32 %v266_v48, %v268_v47 }
 0x1ef   :  { %v270_v50 = vrot.slane %v269_v49, 4 }
 0x1f1   :  { %v271_v51 = vmax.f32 %v269_v49, %v270_v50 }
 0x1f3   :  { %v272_v52 = vrot.slane %v271_v51, 2 }
 0x1f5   :  { %v273_v53 = vmax.f32 %v271_v51, %v272_v52 }
 0x1f7   :  { %v274_v54 = vrot.slane %v273_v53, 1 }
 0x1f9   :  { %v275_v55 = vmax.f32 %v273_v53, %v274_v54 }
 0x1fb   :  { %v276_v56 = vsub.f32 %v257_v46, %v275_v55  ;;  %v277_v57 = vsub.f32 %v262_v44, %v275_v55 }
 0x1fd   :  { %v278_v58 = vmul.f32 1.442695, %v276_v56  ;;  %v280_v59 = vmul.f32 1.442695, %v277_v57 }
 0x1ff   :  { %359 = vpow2.f32 %v278_v58 }
 0x200   :  { %361 = vpow2.f32 %v280_v59 }
 0x209   :  { %v360_v60 = vpop.eup %359 }
 0x20a   :  { %v362_v61 = vpop.eup %361  ;;  %v282_v62 = vsel %vm265_vm5, %v360_v60, 0.0 }
 0x20b   :  { %v283_v63 = vsel %vm267_vm4, %v362_v61, 0.0 }
 0x20c   :  { %v284_v0 = vadd.f32 %v283_v63, %v282_v62 }
 0x20e   :  { %v285_v1 = vrot.slane %v284_v0, 4 }
 0x210   :  { %v286_v2 = vadd.f32 %v285_v1, %v284_v0 }
 0x212   :  { %v287_v3 = vrot.slane %v286_v2, 2 }
 0x214   :  { %v288_v4 = vadd.f32 %v287_v3, %v286_v2 }
 0x216   :  { %v289_v5 = vrot.slane %v288_v4, 1 }
 0x218   :  { %v290_v6 = vadd.f32 %v289_v5, %v288_v4 }
 0x21a   :  { %363 = vrcp.f32 %v290_v6 }
 0x224   :  { %v364_v7 = vpop.eup %363 }
 0x225   :  { %v292_v8 = vmul.f32 %v364_v7, %v360_v60  ;;  %v293_v9 = vmul.f32 %v364_v7, %v362_v61 }
 0x227   :  { %294 = vst.msk [vmem:[%s491_s5] sm:$0xff] %vm265_vm5, %v292_v8 }
 0x228   :  { %295 = vst.msk [vmem:[%s491_s5 + $0x8] sm:$0x3] %vm267_vm4, %v293_v9 }
 0x229   :  { %300 = vsyncpa [#allocation3], 1 }

</bundles_post_ra>
